<compile_context>
chip_gen: v7x
topology: tpu7x:2x2x1
jax: 0.10.0
libtpu: 0.0.40
codegen_flags: <defaults>
</compile_context>

<pallas_src>
import jax
import jax.numpy as jnp
from jax.experimental import pallas as pl
from jax.experimental.pallas import tpu as pltpu

_LANE = 128      # lane width of the 2-D view (last dim)
_ROW_TILE = 2048 # rows per block: 2048 * 128 * 4 B = 1 MiB per buffer


def _trust_kernel(params_ref, p_ref, o_ref):
    """Piecewise-linear trust for one (rows, 128) block.

    params_ref (SMEM, f32[3]): [lambda_l, lambda_u, 1/(lambda_u - lambda_l + 1e-4)]
    p_ref      (VMEM, f32[R, 128]): bin centers
    o_ref      (VMEM, f32[R, 128]): trust values
    """
    l = params_ref[0]
    u = params_ref[1]
    inv_den = params_ref[2]

    p = p_ref[...]
    lin = (u - p) * inv_den
    # PyTorch order: (b < -50 branch is statically dead, beta = pre_beta^2 >= 0)
    #   p <= l -> 1 ; p > u -> 0 ; else (u - p) / (u - l + 1e-4)
    o_ref[...] = jnp.where(p <= l, 1.0, jnp.where(p > u, 0.0, lin))


@jax.jit
def robot_trust_forward(bin_centers, pre_beta, pre_lambda_l, pre_lambda_u):
    """JAX/Pallas equivalent of RobotTrustModel.forward.

    bin_centers: vector (n_bins,)
    pre_*      : scalar parameters (as in the PyTorch module's __init__)
    returns    : f32 vector (n_bins,) of trust values
    """
    bin_centers = jnp.asarray(bin_centers, jnp.float32)
    n_bins = bin_centers.shape[0]

    pre_beta = jnp.asarray(pre_beta, jnp.float32)
    pre_lambda_l = jnp.asarray(pre_lambda_l, jnp.float32)
    pre_lambda_u = jnp.asarray(pre_lambda_u, jnp.float32)

    # `if pre_lambda_l > pre_lambda_u: swap` (value effect only).
    lo = jnp.minimum(pre_lambda_l, pre_lambda_u)
    hi = jnp.maximum(pre_lambda_l, pre_lambda_u)
    lambda_l = 1.0 / (1.0 + jnp.exp(-lo))
    lambda_u = 1.0 / (1.0 + jnp.exp(-hi))
    # beta = pre_beta**2 >= 0, so PyTorch's `b < -50` branch can never fire;
    # it (and the 1/(b*(u-l)) term) is intentionally omitted.
    _beta = pre_beta * pre_beta  # kept for clarity; unused by the hot path
    inv_den = 1.0 / (lambda_u - lambda_l + 0.0001)
    params = jnp.stack([lambda_l, lambda_u, inv_den]).astype(jnp.float32)

    # Lane/sublane-dense 2-D view (rows, 128). For n_bins % 128 == 0 the
    # reshape is free; otherwise we pad the ragged tail (<= 127 elements) and
    # slice it back off at the end (one extra pass — prefer multiples of 128
    # for very large inputs).
    pad = (-n_bins) % _LANE
    flat = jnp.pad(bin_centers, (0, pad)) if pad else bin_centers
    rows = (n_bins + pad) // _LANE
    p2d = flat.reshape(rows, _LANE)

    if rows <= _ROW_TILE:
        block_rows = rows        # single full-array block, <= 1 MiB per buffer
    else:
        block_rows = _ROW_TILE   # 1 MiB tiles, pipelined + megacore-parallel
    n_tiles = pl.cdiv(rows, block_rows)

    trust2d = pl.pallas_call(
        _trust_kernel,
        out_shape=jax.ShapeDtypeStruct((rows, _LANE), jnp.float32),
        grid=(n_tiles,),
        in_specs=[
            # Scalar parameters live whole in SMEM on every grid step.
            pl.BlockSpec(memory_space=pltpu.MemorySpace.SMEM),
            pl.BlockSpec((block_rows, _LANE), lambda i: (i, 0)),
        ],
        out_specs=pl.BlockSpec((block_rows, _LANE), lambda i: (i, 0)),
        compiler_params=pltpu.CompilerParams(
            dimension_semantics=("parallel",)
        ),
    )(params, p2d)

    trust = trust2d.reshape(rows * _LANE)
    if pad:
        trust = trust[:n_bins]
    return trust


def _reference(bin_centers, pre_beta, pre_lambda_l, pre_lambda_u):
    """Pure-JAX reference mirroring the PyTorch code (for sanity check)."""
    lo = min(pre_lambda_l, pre_lambda_u)
    hi = max(pre_lambda_l, pre_lambda_u)
    l = 1.0 / (1.0 + jnp.exp(-jnp.float32(lo)))
    u = 1.0 / (1.0 + jnp.exp(-jnp.float32(hi)))
    # beta = pre_beta**2 >= 0 so the `b < -50` branch never fires.
    p = jnp.asarray(bin_centers, jnp.float32)
    lin = (u - p) / (u - l + 0.0001)
    return jnp.where(p <= l, 1.0, jnp.where(p > u, 0.0, lin))


if __name__ == "__main__":
    # Deterministic parameters exactly as in RobotTrustModel.__init__.
    pre_beta = 4.0
    pre_lambda_l = -10.0
    pre_lambda_u = 10.0

    key = jax.random.PRNGKey(0)

    # Lane-aligned case (zero-copy path).
    n_bins = 128
    bin_centers = jax.random.uniform(key, (n_bins,), jnp.float32)
    out = robot_trust_forward(bin_centers, pre_beta, pre_lambda_l, pre_lambda_u)
    out = jax.block_until_ready(out)
    ref = _reference(bin_centers, pre_beta, pre_lambda_l, pre_lambda_u)
    assert out.shape == (n_bins,)
    assert out.dtype == jnp.float32
    assert jnp.allclose(out, ref, atol=1e-5, rtol=1e-5)

    # Ragged case (exercises the pad + slice tail handling).
    n_bins2 = 100
    bin_centers2 = jax.random.uniform(jax.random.PRNGKey(0), (n_bins2,), jnp.float32)
    out2 = robot_trust_forward(bin_centers2, pre_beta, pre_lambda_l, pre_lambda_u)
    out2 = jax.block_until_ready(out2)
    ref2 = _reference(bin_centers2, pre_beta, pre_lambda_l, pre_lambda_u)
    assert out2.shape == (n_bins2,)
    assert jnp.allclose(out2, ref2, atol=1e-5, rtol=1e-5)

    print("KERNEL_OK")
</pallas_src>

<mosaic_0001>
module attributes {stable_mosaic.version = 11 : i64} {
  func.func @_trust_kernel(%arg0: i32, %arg1: memref<3xf32, #tpu.memory_space<smem>>, %arg2: memref<1x128xf32, #tpu.memory_space<vmem>>, %arg3: memref<1x128xf32, #tpu.memory_space<vmem>>) attributes {dimension_semantics = [#tpu.dimension_semantics<parallel>], iteration_bounds = array<i64: 1>, scalar_prefetch = 0 : i64, scratch_operands = 0 : i64, tpu.core_type = #tpu.core_type<tc>, window_params = [{transform_indices = @transform_0, window_bounds = array<i64: 3>}, {transform_indices = @transform_1, window_bounds = array<i64: 1, 128>}, {transform_indices = @transform_2, window_bounds = array<i64: 1, 128>}]} {
    %c0 = arith.constant 0 : index
    %0 = memref.load %arg1[%c0] : memref<3xf32, #tpu.memory_space<smem>>
    %c1 = arith.constant 1 : index
    %1 = memref.load %arg1[%c1] : memref<3xf32, #tpu.memory_space<smem>>
    %c2 = arith.constant 2 : index
    %2 = memref.load %arg1[%c2] : memref<3xf32, #tpu.memory_space<smem>>
    %c0_0 = arith.constant 0 : index
    %c0_1 = arith.constant 0 : index
    %3 = vector.load %arg2[%c0_0, %c0_1] : memref<1x128xf32, #tpu.memory_space<vmem>>, vector<1x128xf32>
    %4 = vector.broadcast %1 : f32 to vector<1x128xf32>
    %5 = arith.subf %4, %3 : vector<1x128xf32>
    %6 = vector.broadcast %2 : f32 to vector<1x128xf32>
    %7 = arith.mulf %5, %6 : vector<1x128xf32>
    %8 = vector.broadcast %0 : f32 to vector<1x128xf32>
    %9 = arith.cmpf ole, %3, %8 : vector<1x128xf32>
    %10 = vector.broadcast %1 : f32 to vector<1x128xf32>
    %11 = arith.cmpf ogt, %3, %10 : vector<1x128xf32>
    %cst = arith.constant 0.000000e+00 : f32
    %12 = vector.broadcast %cst : f32 to vector<1x128xf32>
    %13 = arith.select %11, %12, %7 : vector<1x128xi1>, vector<1x128xf32>
    %cst_2 = arith.constant 1.000000e+00 : f32
    %14 = vector.broadcast %cst_2 : f32 to vector<1x128xf32>
    %15 = arith.select %9, %14, %13 : vector<1x128xi1>, vector<1x128xf32>
    %c0_3 = arith.constant 0 : index
    %c0_4 = arith.constant 0 : index
    %16 = vector.load %arg3[%c0_3, %c0_4] : memref<1x128xf32, #tpu.memory_space<vmem>>, vector<1x128xf32>
    tpu.vector_store %arg3[%c0_3, %c0_4], %15 {strides = array<i32>} : memref<1x128xf32, #tpu.memory_space<vmem>>, vector<1x128xf32>,
    return
  }
  func.func @transform_0(%arg0: i32) -> i32 {
    %c0_i32 = arith.constant 0 : i32
    %c0_i32_0 = arith.constant 0 : i32
    return %c0_i32 : i32
  }
  func.func @transform_1(%arg0: i32) -> (i32, i32) {
    %c0_i32 = arith.constant 0 : i32
    %c0_i32_0 = arith.constant 0 : i32
    return %arg0, %c0_i32 : i32, i32
  }
  func.func @transform_2(%arg0: i32) -> (i32, i32) {
    %c0_i32 = arith.constant 0 : i32
    %c0_i32_0 = arith.constant 0 : i32
    return %arg0, %c0_i32 : i32, i32
  }
}

</mosaic_0001>

<bundles_post_ra>
// kernel: robot_trust_forward.1
= control target key start
LH: loop header
LB: loop body
LE: loop exit
PB: predicated region body
PF: predicated region fallthrough
CT: control target
= control target key end

     0   :  { %7 = vsyncpa [#allocation4], 0  ;;  %s131_s0 = inlined_call_operand.vmem [shape: f32[3], index: 0, kind: input, shape index: {}]   ;;  %s132_s1 = inlined_call_operand.vmem [shape: f32[1,128], index: 1, kind: input, shape index: {}]   ;;  %s133_s2 = inlined_call_operand.hbm [shape: f32[1,128], index: 2, kind: output, shape index: {}]  }
   0x1   :  { %8 = vsyncpa [#allocation3], 0  ;;  %s15_s11 = sshll.u32 %s131_s0, 4  ;;  %s16_s11 = int_to_ptr.vmem [resolvable:$true] %s15_s11 }
   0x2   :  { %s58_s12 = scalar_lea.vmem %s16_s11, 16  ;;  %p63_p1 = scmp.lt.s32.totalorder %s16_s11, %s16_s11 }
   0x3   :  { %p59_p0 = scmp.ne.s32.totalorder %s16_s11, %s58_s12  ;;  %p64_p2 = scmp.lt.s32.totalorder %s58_s12, %s58_s12 }
   0x5   :  { %p65_p3 = por %p64_p2, %p63_p1 }
   0x7   :  { %p66_p4 = pnand %p65_p3, %p59_p0 }
   0x9   :  { %69 = shalt.err (!%p66_p4)
}
   0xa   :  { %s96_s13 = smov [#allocation2]  }
   0xb   :  { %18 = dma.vmem_to_smem %s16_s11, 16, %s96_s13, [#allocation4]  }
   0xc   :  { %92 = dma.done.wait [#allocation4], 16  }
   0xd   :  { %93 = vsyncadd [#allocation4], 4294967280 }
   0xe   :  { %24 = sfence }
   0xf   :  { %s25_s14 = sld [smem:[#allocation2]]  ;;  %s54_s15 = sld [smem:[#allocation2 + $0x1]]  ;;  %v28_v0 = vld [vmem:[%s132_s1] sm:$0x1] }
  0x10   :  { %s55_s16 = sld [smem:[#allocation2 + $0x2]]  ;;  %s97_s0 = smov [#allocation5]  }
  0x11   :  { %s45_s19 = sshll.u32 %s97_s0, 4  ;;  %s46_s19 = int_to_ptr.vmem [resolvable:$true] %s45_s19 }
  0x12   :  { %s70_s20 = scalar_lea.vmem %s46_s19, 16  ;;  %s74_s21 = scalar_lea.vmem %s46_s19, 32 }
  0x13   :  { %p71_p5 = scmp.ne.s32.totalorder %s46_s19, %s70_s20  ;;  %p75_p6 = scmp.lt.s32.totalorder %s46_s19, %s46_s19 }
  0x14   :  { %p76_p7 = scmp.lt.s32.totalorder %s74_s21, %s70_s20 }
  0x15   :  { %v29_v1 = vstv %s54_s15  ;;  %v33_v2 = vstv %s25_s14 }
  0x16   :  { %v30_v3 = vsub.f32 %v29_v1, %v28_v0  ;;  %v31_v4 = vstv %s55_s16  ;;  %vm35_vm0 = vcmp.gt.f32.partialorder %v28_v0, %v29_v1  ;;  %vm34_vm1 = vcmp.le.f32.partialorder %v28_v0, %v33_v2  ;;  %p77_p8 = por %p76_p7, %p75_p6 }
  0x18   :  { %v32_v5 = vmul.f32 %v31_v4, %v30_v3  ;;  %p78_p9 = pnand %p77_p8, %p71_p5 }
  0x1a   :  { %v36_v6 = vsel %vm35_vm0, 0.0, %v32_v5 }
  0x1b   :  { %v37_v7 = vsel %vm34_vm1, 1.0, %v36_v6 }
  0x1c   :  { %38 = vst [vmem:[#allocation5] sm:$0x1] %v37_v7 }
  0x1d   :  { %81 = shalt.err (!%p78_p9)
}
  0x1e   :  { %s82_s23 = scalar_lea.hbm %s133_s2, 16 }
  0x1f   :  { %p83_p10 = scmp.ne.s32.totalorder %s133_s2, %s82_s23  ;;  %p86_p11 = scmp.lt.u32.totalorder %s82_s23, %s133_s2 }
  0x21   :  { %p88_p12 = pnand %p86_p11, %p83_p10 }
  0x23   :  { %91 = shalt.err (!%p88_p12)
}
  0x24   :  { %48 = dma.vmem_to_hbm [thread:$0]  %s46_s19, 16, %s133_s2, [#allocation3]  }
  0x25   :  { %94 = dma.done.wait [#allocation3], 16  }
  0x26   :  { %95 = vsyncadd [#allocation3], 4294967280 }
  0x27   :  { %52 = vsyncpa [#allocation3], 1 }
  0x28   :  { %53 = vsyncpa [#allocation4], 1 }

</bundles_post_ra>
